<compile_context>
chip_gen: v7x
topology: tpu7x:2x2x1
jax: 0.10.0
libtpu: 0.0.40
codegen_flags: <defaults>
</compile_context>

<pallas_src>
import functools

import jax
import jax.numpy as jnp
from jax import lax
from jax.experimental import pallas as pl
from jax.experimental.pallas import tpu as pltpu

LANES = 128
MAX_TILE_ROWS = 2048   # 2048 x 128 x 4 B = 1 MiB per f32 input block
NUM_CORES = 2          # shard the reduction grid for v7x; harmless on 1-TC chips


def _l1_sum_kernel(p_ref, t_ref, o_ref, *, n_elems, steps_per_core, tile_rows):
    """Accumulate sum(|pred - target|) into a per-core (8,128) f32 partial."""
    c = pl.program_id(0)   # "parallel" core axis
    j = pl.program_id(1)   # "arbitrary" reduction axis

    @pl.when(j == 0)
    def _():
        o_ref[...] = jnp.zeros_like(o_ref)

    # Logical (un-clamped) element index of every lane in this block; anything
    # past n_elems (tail pad, OOB rows of a partial block, or fully-OOB blocks
    # that the index_map clamped) is masked to zero.
    block_start = (c * steps_per_core + j) * (tile_rows * LANES)
    row_ids = lax.broadcasted_iota(jnp.int32, (tile_rows, LANES), 0)
    lane_ids = lax.broadcasted_iota(jnp.int32, (tile_rows, LANES), 1)
    valid = (block_start + row_ids * LANES + lane_ids) < n_elems

    diff = jnp.abs(p_ref[...].astype(jnp.float32) - t_ref[...].astype(jnp.float32))
    diff = jnp.where(valid, diff, 0.0)

    # vreg-shaped partial sum: pure VPU adds each step; the single cross-lane
    # reduce happens once, on the tiny output, in the wrapper.
    o_ref[0] += jnp.sum(diff.reshape(tile_rows // 8, 8, LANES), axis=0)


def _l1_none_kernel(p_ref, t_ref, o_ref, *, loss_weight):
    """reduction='none': loss_weight * |pred - target|, written in final dtype."""
    diff = jnp.abs(p_ref[...].astype(jnp.float32) - t_ref[...].astype(jnp.float32))
    o_ref[...] = (loss_weight * diff).astype(o_ref.dtype)


def _to_lane_slab(x):
    """Flatten to 1D and view as a lane-dense [rows, 128] slab.

    Only pads the (<=127 element) tail needed to reach a multiple of 128, and
    only when actually needed; partial grid tiles are masked in-kernel.
    """
    flat = x.reshape(-1)
    n = flat.shape[0]
    rem = n % LANES
    if rem:
        flat = jnp.pad(flat, (0, LANES - rem))
    return flat.reshape(-1, LANES), n


def _pick_tile_rows(rows):
    # Largest tile (multiple of 8 sublanes) up to MAX_TILE_ROWS; for small
    # inputs this matches the array so there is no partial block at all.
    return min(MAX_TILE_ROWS, max(8, -(-rows // 8) * 8))


@functools.partial(jax.jit, static_argnames=("loss_weight", "reduction"))
def l1_loss(pred, target, loss_weight=1.0, reduction="mean"):
    """Pallas implementation of `loss_weight * F.l1_loss(pred, target, reduction)`."""
    assert pred.shape == target.shape, "pred/target shapes must match"
    orig_shape = pred.shape
    orig_dtype = jnp.promote_types(pred.dtype, target.dtype)
    loss_weight = float(loss_weight)

    p2d, n_elems = _to_lane_slab(pred)
    t2d, _ = _to_lane_slab(target)
    rows = p2d.shape[0]
    tile_rows = _pick_tile_rows(rows)
    total_steps = pl.cdiv(rows, tile_rows)
    in_itemsize = jnp.dtype(pred.dtype).itemsize

    if reduction == "none":
        out2d = pl.pallas_call(
            functools.partial(_l1_none_kernel, loss_weight=loss_weight),
            out_shape=jax.ShapeDtypeStruct((rows, LANES), orig_dtype),
            grid_spec=pltpu.PrefetchScalarGridSpec(
                num_scalar_prefetch=0,
                grid=(total_steps,),
                in_specs=[
                    pl.BlockSpec((tile_rows, LANES), lambda i: (i, 0)),
                    pl.BlockSpec((tile_rows, LANES), lambda i: (i, 0)),
                ],
                out_specs=pl.BlockSpec((tile_rows, LANES), lambda i: (i, 0)),
            ),
            compiler_params=pltpu.CompilerParams(
                dimension_semantics=("parallel",)),
            cost_estimate=pl.CostEstimate(
                flops=2 * n_elems,
                transcendentals=0,
                bytes_accessed=n_elems * (2 * in_itemsize
                                          + jnp.dtype(orig_dtype).itemsize)),
        )(p2d, t2d)
        if rows * LANES != n_elems:
            return out2d.reshape(-1)[:n_elems].reshape(orig_shape)
        return out2d.reshape(orig_shape)

    if reduction not in ("mean", "sum"):
        raise ValueError(f"unsupported reduction: {reduction}")

    steps_per_core = pl.cdiv(total_steps, NUM_CORES)
    last_block = total_steps - 1

    def in_map(c, j):
        # Clamp fully-OOB blocks (tail of the 2-way core split) to the last
        # valid block; their contribution is masked to zero in-kernel.
        return (jnp.minimum(c * steps_per_core + j, last_block), 0)

    partials = pl.pallas_call(
        functools.partial(_l1_sum_kernel, n_elems=n_elems,
                          steps_per_core=steps_per_core, tile_rows=tile_rows),
        out_shape=jax.ShapeDtypeStruct((NUM_CORES, 8, LANES), jnp.float32),
        grid_spec=pltpu.PrefetchScalarGridSpec(
            num_scalar_prefetch=0,
            grid=(NUM_CORES, steps_per_core),
            in_specs=[
                pl.BlockSpec((tile_rows, LANES), in_map),
                pl.BlockSpec((tile_rows, LANES), in_map),
            ],
            out_specs=pl.BlockSpec((1, 8, LANES), lambda c, j: (c, 0, 0)),
        ),
        compiler_params=pltpu.CompilerParams(
            dimension_semantics=("parallel", "arbitrary")),
        cost_estimate=pl.CostEstimate(
            flops=3 * n_elems,
            transcendentals=0,
            bytes_accessed=2 * n_elems * in_itemsize),
    )(p2d, t2d)

    total = jnp.sum(partials)  # tiny (2*8*128) final reduce outside the kernel
    if reduction == "mean":
        total = total / jnp.float32(n_elems)
    return (loss_weight * total).astype(orig_dtype)


if __name__ == "__main__":
    key = jax.random.PRNGKey(0)
    kp, kt = jax.random.split(key)
    # NCHW inputs, consistent with how pixel losses are used on images.
    pred = jax.random.normal(kp, (2, 4, 16, 16), dtype=jnp.float32)
    target = jax.random.normal(kt, (2, 4, 16, 16), dtype=jnp.float32)

    # reduction='mean' (module defaults)
    out_mean = jax.block_until_ready(
        l1_loss(pred, target, loss_weight=1.0, reduction="mean"))
    ref_mean = 1.0 * jnp.mean(jnp.abs(pred - target))
    assert jnp.allclose(out_mean, ref_mean, rtol=1e-5, atol=1e-6), (out_mean, ref_mean)

    # reduction='sum'
    out_sum = jax.block_until_ready(
        l1_loss(pred, target, loss_weight=0.5, reduction="sum"))
    ref_sum = 0.5 * jnp.sum(jnp.abs(pred - target))
    assert jnp.allclose(out_sum, ref_sum, rtol=1e-5, atol=1e-4), (out_sum, ref_sum)

    # reduction='none'
    out_none = jax.block_until_ready(
        l1_loss(pred, target, loss_weight=2.0, reduction="none"))
    ref_none = 2.0 * jnp.abs(pred - target)
    assert out_none.shape == ref_none.shape
    assert jnp.allclose(out_none, ref_none, rtol=1e-5, atol=1e-6)

    print("KERNEL_OK")
</pallas_src>

<mosaic_0001>
module attributes {stable_mosaic.version = 11 : i64} {
  func.func @_l1_sum_kernel(%arg0: i32, %arg1: i32, %arg2: memref<16x128xf32, #tpu.memory_space<vmem>>, %arg3: memref<16x128xf32, #tpu.memory_space<vmem>>, %arg4: memref<1x8x128xf32, #tpu.memory_space<vmem>>) attributes {dimension_semantics = [#tpu.dimension_semantics<parallel>, #tpu.dimension_semantics<arbitrary>], iteration_bounds = array<i64: 2, 1>, scalar_prefetch = 0 : i64, scratch_operands = 0 : i64, tpu.core_type = #tpu.core_type<tc>, window_params = [{transform_indices = @transform_0, window_bounds = array<i64: 16, 128>}, {transform_indices = @transform_1, window_bounds = array<i64: 16, 128>}, {transform_indices = @transform_2, window_bounds = array<i64: 1, 8, 128>}]} {
    %c0_i32 = arith.constant 0 : i32
    %0 = arith.cmpi eq, %arg1, %c0_i32 : i32
    %1 = arith.extui %0 : i1 to i32
    %c0_i32_0 = arith.constant 0 : i32
    %2 = arith.cmpi ne, %1, %c0_i32_0 : i32
    scf.if %2 {
      %cst_12 = arith.constant 0.000000e+00 : f32
      %29 = vector.broadcast %cst_12 : f32 to vector<1x8x128xf32>
      %c0_13 = arith.constant 0 : index
      %c0_14 = arith.constant 0 : index
      %c0_15 = arith.constant 0 : index
      %30 = vector.load %arg4[%c0_13, %c0_14, %c0_15] : memref<1x8x128xf32, #tpu.memory_space<vmem>>, vector<1x8x128xf32>
      tpu.vector_store %arg4[%c0_13, %c0_14, %c0_15], %29 {strides = array<i32>} : memref<1x8x128xf32, #tpu.memory_space<vmem>>, vector<1x8x128xf32>,
    } else {
    }
    %c1_i32 = arith.constant 1 : i32
    %3 = arith.muli %arg0, %c1_i32 : i32
    %4 = arith.addi %3, %arg1 : i32
    %c2048_i32 = arith.constant 2048 : i32
    %5 = arith.muli %4, %c2048_i32 : i32
    %6 = tpu.iota {dimensions = array<i32: 0>} : vector<16x128xi32>
    %7 = tpu.iota {dimensions = array<i32: 1>} : vector<16x128xi32>
    %c128_i32 = arith.constant 128 : i32
    %8 = vector.broadcast %c128_i32 : i32 to vector<16x128xi32>
    %9 = arith.muli %6, %8 : vector<16x128xi32>
    %10 = vector.broadcast %5 : i32 to vector<16x128xi32>
    %11 = arith.addi %10, %9 : vector<16x128xi32>
    %12 = arith.addi %11, %7 : vector<16x128xi32>
    %c2048_i32_1 = arith.constant 2048 : i32
    %13 = vector.broadcast %c2048_i32_1 : i32 to vector<16x128xi32>
    %14 = arith.cmpi slt, %12, %13 : vector<16x128xi32>
    %c0 = arith.constant 0 : index
    %c0_2 = arith.constant 0 : index
    %15 = vector.load %arg2[%c0, %c0_2] : memref<16x128xf32, #tpu.memory_space<vmem>>, vector<16x128xf32>
    %c0_3 = arith.constant 0 : index
    %c0_4 = arith.constant 0 : index
    %16 = vector.load %arg3[%c0_3, %c0_4] : memref<16x128xf32, #tpu.memory_space<vmem>>, vector<16x128xf32>
    %17 = arith.subf %15, %16 : vector<16x128xf32>
    %18 = math.absf %17 : vector<16x128xf32>
    %cst = arith.constant 0.000000e+00 : f32
    %19 = vector.broadcast %cst : f32 to vector<16x128xf32>
    %20 = arith.select %14, %18, %19 : vector<16x128xi1>, vector<16x128xf32>
    %c0_5 = arith.constant 0 : index
    %c0_6 = arith.constant 0 : index
    %c0_7 = arith.constant 0 : index
    %21 = vector.load %arg4[%c0_5, %c0_6, %c0_7] : memref<1x8x128xf32, #tpu.memory_space<vmem>>, vector<1x8x128xf32>
    %22 = vector.shape_cast %21 : vector<1x8x128xf32> to vector<8x128xf32>
    %23 = vector.shape_cast %20 : vector<16x128xf32> to vector<2x8x128xf32>
    %cst_8 = arith.constant dense<0.000000e+00> : vector<8x128xf32>
    %24 = vector.multi_reduction <add>, %23, %cst_8 [0] : vector<2x8x128xf32> to vector<8x128xf32>
    %25 = arith.addf %22, %24 : vector<8x128xf32>
    %c0_9 = arith.constant 0 : index
    %c0_10 = arith.constant 0 : index
    %c0_11 = arith.constant 0 : index
    %26 = vector.load %arg4[%c0_9, %c0_10, %c0_11] : memref<1x8x128xf32, #tpu.memory_space<vmem>>, vector<1x8x128xf32>
    %27 = vector.shape_cast %26 : vector<1x8x128xf32> to vector<8x128xf32>
    %28 = vector.shape_cast %25 : vector<8x128xf32> to vector<1x8x128xf32>
    tpu.vector_store %arg4[%c0_9, %c0_10, %c0_11], %28 {strides = array<i32>} : memref<1x8x128xf32, #tpu.memory_space<vmem>>, vector<1x8x128xf32>,
    return
  }
  func.func @transform_0(%arg0: i32, %arg1: i32) -> (i32, i32) {
    %c1_i32 = arith.constant 1 : i32
    %0 = arith.muli %arg0, %c1_i32 : i32
    %1 = arith.addi %0, %arg1 : i32
    %c0_i32 = arith.constant 0 : i32
    %2 = arith.minsi %1, %c0_i32 : i32
    %c0_i32_0 = arith.constant 0 : i32
    %c0_i32_1 = arith.constant 0 : i32
    return %2, %c0_i32_0 : i32, i32
  }
  func.func @transform_1(%arg0: i32, %arg1: i32) -> (i32, i32) {
    %c1_i32 = arith.constant 1 : i32
    %0 = arith.muli %arg0, %c1_i32 : i32
    %1 = arith.addi %0, %arg1 : i32
    %c0_i32 = arith.constant 0 : i32
    %2 = arith.minsi %1, %c0_i32 : i32
    %c0_i32_0 = arith.constant 0 : i32
    %c0_i32_1 = arith.constant 0 : i32
    return %2, %c0_i32_0 : i32, i32
  }
  func.func @transform_2(%arg0: i32, %arg1: i32) -> (i32, i32, i32) {
    %c0_i32 = arith.constant 0 : i32
    %c0_i32_0 = arith.constant 0 : i32
    %c0_i32_1 = arith.constant 0 : i32
    return %arg0, %c0_i32, %c0_i32_0 : i32, i32, i32
  }
}

</mosaic_0001>

<bundles_post_ra>
// kernel: l1_loss.1
= control target key start
LH: loop header
LB: loop body
LE: loop exit
PB: predicated region body
PF: predicated region fallthrough
CT: control target
= control target key end

     0   :  { %s405_s9 = smov 0   ;;  %s407_s10 = smov 0   ;;  %s448_s0 = inlined_call_operand.vmem [shape: f32[16,128], index: 0, kind: input, shape index: {}]   ;;  %s449_s1 = inlined_call_operand.vmem [shape: f32[16,128], index: 1, kind: input, shape index: {}]   ;;  %s450_s2 = inlined_call_operand.vmem [shape: f32[2,8,128], index: 2, kind: output, shape index: {}]  }
   0x1   :  { %s409_s11 = smov 0  }
   0x2 LB: > { %s24_s12 = sadd.s32 1, %s384_s10  ;;  %p332_p0 = scmp.ge.s32.totalorder %s388_s11, 1  ;;  %s388_s11 = sphi %s409_s11, %s12_s11   ;;  %s384_s10 = sphi %s407_s10, %s452_s10   ;;  %s380_s9 = sphi %s405_s9, %s451_s9  }
   0x3   : > { %p26_p1 = scmp.ge.s32.totalorder %s24_s12, 2  ;;  %p160_p2 = scmp.lt.s32.totalorder %s388_s11, 3 }
   0x5   : > { %s454_s12 = smov (%p26_p1, %s24_s12), 0  ;;  %p161_p3 = pnand %p332_p0, %p160_p2 }
   0x6   : > { %p193_p4 = scmp.lt.s32.totalorder (!%p161_p3), %s380_s9, 0  ;;  %v227_v0 = vlaneseq (!%p161_p3)  ;;  %s338_s13 = sshll.u32 (!%p161_p3), %s380_s9, 11 }
   0x7   : > { %164 = sbr.rel (%p161_p3) target bundleno = 32 (0x20), region = 28  ;;  %v234_v2 = vstv (!%p161_p3), %s338_s13  ;;  %p216_p6 = scmp.lt.s32.totalorder (!%p161_p3), %s380_s9, 1 }
   0x8   : > { %v228_v1 = vshrl.u32 (!%p161_p3), %v227_v0, 7  ;;  %v231_v5 = vand.u32 (!%p161_p3), 127, %v227_v0 }
   0xa   : > { %v229_v3 = vadd.s32 (!%p161_p3), 8, %v228_v1  ;;  %v232_v4 = vmul.u32 (!%p161_p3), 128, %v228_v1 }
   0xc   : > { %v233_v6 = vmul.u32 (!%p161_p3), 128, %v229_v3  ;;  %v235_v7 = vadd.s32 (!%p161_p3), %v234_v2, %v232_v4 }
   0xe   : > { %s194_s14 = scalar_select %p193_p4, %s380_s9, 0  ;;  %v236_v8 = vadd.s32 %v234_v2, %v233_v6  ;;  %v237_v9 = vadd.s32 %v235_v7, %v231_v5 }
   0xf   : > { %s458_s9 = smov (!%p216_p6, %s380_s9), 1 }
  0x10   : > { %s333_s15 = sshll.u32 %s194_s14, 1  ;;  %v238_v10 = vadd.s32 %v236_v8, %v231_v5  ;;  %vm239_vm0 = vcmp.lt.s32.totalorder %v237_v9, 2048  ;;  %s337_s23 = sshll.u32 %s458_s9, 3 }
  0x11   : > { %p196_p5 = scmp.lt.s32.totalorder %s333_s15, 1  ;;  %s219_s26 = scalar_lea.vmem %s450_s2, %s337_s23 }
  0x12   : > { %vm240_vm1 = vcmp.lt.s32.totalorder %v238_v10, 2048 }
  0x13   : > { %s456_s15 = smov (!%p196_p5, %s333_s15), 1 }
  0x14   : > { %s334_s16 = sshll.u32 %s456_s15, 3 }
  0x15   : > { %s199_s19 = scalar_lea.vmem %s448_s0, %s334_s16  ;;  %s211_s22 = scalar_lea.vmem %s449_s1, %s334_s16 }
  0x16   : > { %v241_v11 = vld [vmem:[%s199_s19] sm:$0xff]  ;;  %v242_v12 = vld [vmem:[%s199_s19 + $0x8] sm:$0xff] }
  0x17   : > { %v243_v13 = vld [vmem:[%s211_s22] sm:$0xff]  ;;  %v244_v14 = vld [vmem:[%s211_s22 + $0x8] sm:$0xff] }
  0x18   : > { %v245_v15 = vsub.f32 %v241_v11, %v243_v13  ;;  %v246_v16 = vsub.f32 %v242_v12, %v244_v14 }
  0x1a   : > { %v247_v17 = vand.u32 2147483647, %v245_v15  ;;  %v248_v18 = vand.u32 2147483647, %v246_v16 }
  0x1c   : > { %v249_v19 = vsel %vm239_vm0, %v247_v17, 0.0  ;;  %v250_v20 = vsel %vm240_vm1, %v248_v18, 0.0 }
  0x1d   : > { %v252_v21 = vadd.f32 %v250_v20, %v249_v19 }
  0x1f   : > { %254 = vst [vmem:[%s219_s26] sm:$0xff] %v252_v21 }
  0x20 PF: > { %s12_s11 = sadd.s32 1, %s388_s11   ;;  %s451_s9 = smov %s384_s10 }
  0x21   : > { %p9_p7 = scmp.ge.s32.totalorder %s12_s11, 4   ;;  %s452_s10 = smov %s454_s12 }
  0x23   :  { %11 = sbr.rel (!%p9_p7) target bundleno = 2 (0x2), region = 65 }

</bundles_post_ra>
